<compile_context>
chip_gen: v7x
topology: tpu7x:2x2x1
jax: 0.10.0
libtpu: 0.0.40
codegen_flags: <defaults>
</compile_context>

<pallas_src>
import jax
import jax.numpy as jnp
from jax.experimental import pallas as pl
from jax.experimental.pallas import tpu as pltpu

# ---------------- sizes ----------------
B = 2            # batch
C = 4            # channels
H = W = 16       # spatial
FA = 32          # modelA feature dim (fc replaced with Identity)
FB = 32          # modelB feature dim (classifier replaced with Identity)
IN_FEATS = FA + FB           # "input" arg of MyEnsemble -> fc1 in_features
OUT = 507                    # fc1 out_features
OUT_PAD = 512                # lane-dense (multiple of 128) padded out dim
NEG_BIG = -1e30              # pad-logit bias -> softmax prob exactly 0

# head blob row layout (f32, [8, OUT_PAD]):
#   rows 0..C-1 , cols 0..IN_FEATS-1 : wab  (fused [wa|wb], 1/(H*W) folded in)
#   row  C      , cols 0..IN_FEATS-1 : bab  (fused [ba|bb])
#   row  C+1    , all cols           : fc1 bias, padded with -1e30
#   rows C+2..7                      : zero (sublane padding)


def ensemble_kernel(x_ref, head_ref, w1_ref, o_ref):
    """Fused: spatial sum-pool -> fused backbone head -> fc1 (bf16 MXU) -> softmax."""
    x = x_ref[...]                                    # [B, C, H*W] f32

    # Global average pool: the 1/(H*W) scale is pre-folded into wab, so a
    # plain spatial (lane) sum suffices here.
    pooled = jnp.sum(x, axis=-1)                      # [B, C]

    wab = head_ref[0:C, 0:IN_FEATS]                   # [C, FA+FB]
    bab = head_ref[C:C + 1, 0:IN_FEATS]               # [1, FA+FB]
    b1p = head_ref[C + 1:C + 2, :]                    # [1, OUT_PAD] f32

    # Fused backbone heads.  K = C = 4, so the MXU would be ~99% idle — do 4
    # independent broadcast multiplies on the VPU and tree-sum them (no
    # serial dependency chain), bias last.
    p = [pooled[:, c:c + 1] * wab[c:c + 1, :] for c in range(C)]
    feat = ((p[0] + p[1]) + (p[2] + p[3])) + bab      # [B, FA+FB]
    feat = jnp.maximum(feat, 0.0)                     # ReLU
    # `feat` IS cat((out1, out2), dim=1): wab/bab are the concatenated params.

    # fc1: single MXU matmul, bf16 operands, f32 accumulate; bias added in f32.
    logits = jnp.dot(feat.astype(jnp.bfloat16), w1_ref[...],
                     preferred_element_type=jnp.float32) + b1p   # [B, OUT_PAD]

    # torch.softmax(out, dim=1) — numerically stable, EXACT divide (the
    # approx reciprocal bought nothing and loosened row sums).  Padded
    # columns carry a -1e30 bias so exp() gives exactly 0 there.
    m = jnp.max(logits, axis=1, keepdims=True)
    e = jnp.exp(logits - m)
    o_ref[...] = e / jnp.sum(e, axis=1, keepdims=True)


def prepare_params(raw_params):
    """One-time host-side fusion/padding of the FROZEN params (review item 1).

    Returns (head_blob f32 [8, OUT_PAD], w1 bf16 [IN_FEATS, OUT_PAD]).
    """
    wa, ba, wb, bb, w1, b1 = raw_params
    inv_hw = 1.0 / float(H * W)

    wab = jnp.concatenate([wa, wb], axis=1) * inv_hw           # [C, FA+FB]
    bab = jnp.concatenate([ba, bb], axis=0)                    # [FA+FB]
    b1p = jnp.full((OUT_PAD,), NEG_BIG, jnp.float32).at[:OUT].set(b1)

    head = jnp.zeros((8, OUT_PAD), jnp.float32)
    head = head.at[0:C, 0:IN_FEATS].set(wab)
    head = head.at[C, 0:IN_FEATS].set(bab)
    head = head.at[C + 1, :].set(b1p)

    # fc1 weight: zero-padded 507 -> 512 columns (pads MUST stay exactly 0),
    # stored bf16 for the MXU's native path + half the weight DMA.
    w1p = jnp.zeros((IN_FEATS, OUT_PAD), jnp.float32).at[:, :OUT].set(w1)
    w1_bf16 = w1p.astype(jnp.bfloat16)

    return jax.device_put(head), jax.device_put(w1_bf16)


@jax.jit
def ensemble_forward(x_nchw, head_blob, w1_bf16):
    """x_nchw: [B, C, H, W] float32 -> softmax probs [B, 507]."""
    b, c, h, w = x_nchw.shape
    x_flat = x_nchw.reshape(b, c, h * w)              # free (no copy)

    vmem = pl.BlockSpec(memory_space=pltpu.MemorySpace.VMEM)
    probs_pad = pl.pallas_call(
        ensemble_kernel,
        out_shape=jax.ShapeDtypeStruct((b, OUT_PAD), jnp.float32),
        in_specs=[vmem, vmem, vmem],
        out_specs=vmem,
        # No grid: B=2, ~100 KiB total resident VMEM.  For a real batch, add
        # a batch grid axis here with dimension_semantics=("parallel",) to
        # use v7x's second TensorCore (review items 7/8).
    )(x_flat, head_blob, w1_bf16)

    # Slice back to the module's 507 classes.  Pad columns are exactly 0
    # probability, so consumers that tolerate a 512-wide output could skip
    # this copy (review item 10).
    return probs_pad[:, :OUT]


def init_params(key):
    ks = jax.random.split(key, 6)
    scale = 0.1
    wa = scale * jax.random.normal(ks[0], (C, FA), jnp.float32)
    ba = scale * jax.random.normal(ks[1], (FA,), jnp.float32)
    wb = scale * jax.random.normal(ks[2], (C, FB), jnp.float32)
    bb = scale * jax.random.normal(ks[3], (FB,), jnp.float32)
    # fc1: nn.Linear(IN_FEATS, 507); stored as [IN_FEATS, OUT] for x @ W
    w1 = scale * jax.random.normal(ks[4], (IN_FEATS, OUT), jnp.float32)
    b1 = scale * jax.random.normal(ks[5], (OUT,), jnp.float32)
    return wa, ba, wb, bb, w1, b1


if __name__ == "__main__":
    key = jax.random.PRNGKey(0)
    kx, kp = jax.random.split(key)
    x = jax.random.normal(kx, (B, C, H, W), jnp.float32)    # NCHW, like PyTorch

    raw_params = init_params(kp)
    head_blob, w1_bf16 = prepare_params(raw_params)          # one-time prep

    out = ensemble_forward(x, head_blob, w1_bf16)
    out = jax.block_until_ready(out)

    assert out.shape == (B, OUT), out.shape
    # softmax rows must sum to 1 (exact divide -> tight tolerance)
    assert jnp.allclose(jnp.sum(out, axis=1), 1.0, atol=1e-4)
    assert bool(jnp.all(out >= 0.0))
    print("KERNEL_OK")
</pallas_src>

<mosaic_0001>
module attributes {stable_mosaic.version = 11 : i64} {
  func.func @ensemble_kernel(%arg0: memref<2x4x256xf32, #tpu.memory_space<vmem>>, %arg1: memref<8x512xf32, #tpu.memory_space<vmem>>, %arg2: memref<64x512xbf16, #tpu.memory_space<vmem>>, %arg3: memref<2x512xf32, #tpu.memory_space<vmem>>) attributes {dimension_semantics = [], scalar_prefetch = 0 : i64, scratch_operands = 0 : i64, tpu.core_type = #tpu.core_type<tc>} {
    %c0 = arith.constant 0 : index
    %c0_0 = arith.constant 0 : index
    %c0_1 = arith.constant 0 : index
    %0 = vector.load %arg0[%c0, %c0_0, %c0_1] : memref<2x4x256xf32, #tpu.memory_space<vmem>>, vector<2x4x256xf32>
    %cst = arith.constant dense<0.000000e+00> : vector<2x4xf32>
    %1 = vector.multi_reduction <add>, %0, %cst [2] : vector<2x4x256xf32> to vector<2x4xf32>
    %c0_2 = arith.constant 0 : index
    %c0_3 = arith.constant 0 : index
    %2 = vector.load %arg1[%c0_2, %c0_3] : memref<8x512xf32, #tpu.memory_space<vmem>>, vector<4x64xf32>
    %c4 = arith.constant 4 : index
    %c0_4 = arith.constant 0 : index
    %3 = vector.load %arg1[%c4, %c0_4] : memref<8x512xf32, #tpu.memory_space<vmem>>, vector<1x64xf32>
    %c5 = arith.constant 5 : index
    %c0_5 = arith.constant 0 : index
    %4 = vector.load %arg1[%c5, %c0_5] : memref<8x512xf32, #tpu.memory_space<vmem>>, vector<1x512xf32>
    %5 = vector.extract_strided_slice %1 {offsets = [0, 0], sizes = [2, 1], strides = [1, 1]} : vector<2x4xf32> to vector<2x1xf32>
    %6 = vector.extract_strided_slice %2 {offsets = [0, 0], sizes = [1, 64], strides = [1, 1]} : vector<4x64xf32> to vector<1x64xf32>
    %7 = vector.broadcast %5 : vector<2x1xf32> to vector<2x64xf32>
    %8 = vector.broadcast %6 : vector<1x64xf32> to vector<2x64xf32>
    %9 = arith.mulf %7, %8 : vector<2x64xf32>
    %10 = vector.extract_strided_slice %1 {offsets = [0, 1], sizes = [2, 1], strides = [1, 1]} : vector<2x4xf32> to vector<2x1xf32>
    %11 = vector.extract_strided_slice %2 {offsets = [1, 0], sizes = [1, 64], strides = [1, 1]} : vector<4x64xf32> to vector<1x64xf32>
    %12 = vector.broadcast %10 : vector<2x1xf32> to vector<2x64xf32>
    %13 = vector.broadcast %11 : vector<1x64xf32> to vector<2x64xf32>
    %14 = arith.mulf %12, %13 : vector<2x64xf32>
    %15 = vector.extract_strided_slice %1 {offsets = [0, 2], sizes = [2, 1], strides = [1, 1]} : vector<2x4xf32> to vector<2x1xf32>
    %16 = vector.extract_strided_slice %2 {offsets = [2, 0], sizes = [1, 64], strides = [1, 1]} : vector<4x64xf32> to vector<1x64xf32>
    %17 = vector.broadcast %15 : vector<2x1xf32> to vector<2x64xf32>
    %18 = vector.broadcast %16 : vector<1x64xf32> to vector<2x64xf32>
    %19 = arith.mulf %17, %18 : vector<2x64xf32>
    %20 = vector.extract_strided_slice %1 {offsets = [0, 3], sizes = [2, 1], strides = [1, 1]} : vector<2x4xf32> to vector<2x1xf32>
    %21 = vector.extract_strided_slice %2 {offsets = [3, 0], sizes = [1, 64], strides = [1, 1]} : vector<4x64xf32> to vector<1x64xf32>
    %22 = vector.broadcast %20 : vector<2x1xf32> to vector<2x64xf32>
    %23 = vector.broadcast %21 : vector<1x64xf32> to vector<2x64xf32>
    %24 = arith.mulf %22, %23 : vector<2x64xf32>
    %25 = arith.addf %9, %14 : vector<2x64xf32>
    %26 = arith.addf %19, %24 : vector<2x64xf32>
    %27 = arith.addf %25, %26 : vector<2x64xf32>
    %28 = vector.broadcast %3 : vector<1x64xf32> to vector<2x64xf32>
    %29 = arith.addf %27, %28 : vector<2x64xf32>
    %cst_6 = arith.constant 0.000000e+00 : f32
    %30 = vector.broadcast %cst_6 : f32 to vector<2x64xf32>
    %31 = arith.maximumf %29, %30 : vector<2x64xf32>
    %32 = arith.truncf %31 : vector<2x64xf32> to vector<2x64xbf16>
    %c0_7 = arith.constant 0 : index
    %c0_8 = arith.constant 0 : index
    %33 = vector.load %arg2[%c0_7, %c0_8] : memref<64x512xbf16, #tpu.memory_space<vmem>>, vector<64x512xbf16>
    %cst_9 = arith.constant dense<0.000000e+00> : vector<2x512xf32>
    %34 = tpu.matmul %32, %33, %cst_9 {dimension_numbers = #tpu.dot_dimension_numbers<[1], [0], [0], [1], [0, 0, 1, 1], [], []>} : vector<2x64xbf16>, vector<64x512xbf16>, vector<2x512xf32> -> vector<2x512xf32>
    %35 = vector.broadcast %4 : vector<1x512xf32> to vector<2x512xf32>
    %36 = arith.addf %34, %35 : vector<2x512xf32>
    %cst_10 = arith.constant dense<0xFF800000> : vector<2xf32>
    %37 = vector.multi_reduction <maximumf>, %36, %cst_10 [1] : vector<2x512xf32> to vector<2xf32>
    %38 = vector.shape_cast %37 : vector<2xf32> to vector<2x1xf32>
    %39 = vector.broadcast %38 : vector<2x1xf32> to vector<2x512xf32>
    %40 = arith.subf %36, %39 : vector<2x512xf32>
    %41 = math.exp %40 : vector<2x512xf32>
    %cst_11 = arith.constant dense<0.000000e+00> : vector<2xf32>
    %42 = vector.multi_reduction <add>, %41, %cst_11 [1] : vector<2x512xf32> to vector<2xf32>
    %43 = vector.shape_cast %42 : vector<2xf32> to vector<2x1xf32>
    %44 = vector.broadcast %43 : vector<2x1xf32> to vector<2x512xf32>
    %45 = arith.divf %41, %44 : vector<2x512xf32>
    %c0_12 = arith.constant 0 : index
    %c0_13 = arith.constant 0 : index
    %46 = vector.load %arg3[%c0_12, %c0_13] : memref<2x512xf32, #tpu.memory_space<vmem>>, vector<2x512xf32>
    tpu.vector_store %arg3[%c0_12, %c0_13], %45 {strides = array<i32>} : memref<2x512xf32, #tpu.memory_space<vmem>>, vector<2x512xf32>,
    return
  }
}

</mosaic_0001>

<bundles_post_ra>
// kernel: ensemble_forward.1
= control target key start
LH: loop header
LB: loop body
LE: loop exit
PB: predicated region body
PF: predicated region fallthrough
CT: control target
= control target key end

     0   :  { %8 = vsyncpa [#allocation3], 0  ;;  %s1320_s0 = inlined_call_operand.vmem [shape: f32[2,4,256], index: 0, kind: input, shape index: {}]   ;;  %s1321_s1 = inlined_call_operand.hbm [shape: f32[8,512], index: 1, kind: input, shape index: {}]   ;;  %s1322_s2 = inlined_call_operand.vmem [shape: bf16[64,512], index: 2, kind: input, shape index: {}]   ;;  %s1323_s3 = inlined_call_operand.hbm [shape: f32[2,512], index: 3, kind: output, shape index: {}]  }
   0x1   :  { %9 = vsyncpa [#allocation4], 0  ;;  %s1005_s12 = smov [#allocation2]   ;;  %s957_s16 = scalar_lea.hbm %s1321_s1, 512 }
   0x2   :  { %s18_s13 = sshll.u32 %s1005_s12, 4  ;;  %p958_p0 = scmp.ne.s32.totalorder %s1321_s1, %s957_s16  ;;  %s19_s13 = int_to_ptr.vmem [resolvable:$true] %s18_s13 }
   0x3   :  { %p961_p1 = scmp.lt.u32.totalorder %s957_s16, %s1321_s1 }
   0x5   :  { %p963_p2 = pnand %p961_p1, %p958_p0 }
   0x7   :  { %966 = shalt.err (!%p963_p2)
}
   0x8   :  { %s967_s21 = scalar_lea.vmem %s19_s13, 512  ;;  %p972_p4 = scmp.lt.s32.totalorder %s19_s13, %s19_s13 }
   0x9   :  { %p968_p3 = scmp.ne.s32.totalorder %s19_s13, %s967_s21  ;;  %p973_p5 = scmp.lt.s32.totalorder %s967_s21, %s967_s21 }
   0xb   :  { %p974_p6 = por %p973_p5, %p972_p4 }
   0xd   :  { %p975_p7 = pnand %p974_p6, %p968_p3 }
   0xf   :  { %978 = shalt.err (!%p975_p7)
}
  0x10   :  { %21 = dma.hbm_to_vmem [thread:$0]  %s1321_s1, 512, %s19_s13, [#allocation3]  }
  0x11   :  { %1001 = dma.done.wait [#allocation3], 512  }
  0x12   :  { %1002 = vsyncadd [#allocation3], 4294966784  ;;  %v1324_v0 = vlaneseq  ;;  %vm36_vm0 = vcmask 1043456   ;;  %v47_v3 = vld [vmem:[#allocation2] sm:$0xf]  ;;  %v29_v5 = vld [vmem:[%s1320_s0 + $0x8] sm:$0xff] }
  0x13   :  { %v28_v4 = vld [vmem:[%s1320_s0] sm:$0xff]  ;;  %v33_v9 = vcombine.high %v29_v5, %v29_v5  ;;  %v42_v10 = vsel %vm36_vm0, %v29_v5, 0.0  ;;  %v1006_v22 = vmov 0   ;;  %vm571_vm1 = vcmask 130112  }
  0x14   :  { %v1042_v1 = vshrl.u32 %v1324_v0, 7  ;;  %v32_v7 = vcombine.high %v28_v4, %v28_v4  ;;  %v37_v8 = vsel %vm36_vm0, %v28_v4, 0.0  ;;  %v48_v21 = vld [vmem:[#allocation2 + $0x4] ss:$0 sm:$0xff]  ;;  %920 = vset.pattern.permute.xlu0 %v1006_v22  ;;  %919 = vset.pattern.permute.xlu1 %v1006_v22  ;;  %vm578_vm2 = vcmask 195712  }
  0x15   :  { %v43_v13 = vsel %vm36_vm0, %v33_v9, 0.0  ;;  %773 = vmatprep.mubr.bf16.mxu0 %v1006_v22  ;;  %814 = vmatprep.mubr.bf16.mxu1 %v1006_v22  ;;  %vm585_vm3 = vcmask 261312   ;;  %vm592_vm4 = vcmask 326912   ;;  %vm599_vm5 = vcmask 392512  }
  0x16   :  { %v1045_v2 = vsub.s32 0, %v1042_v1  ;;  %v1055_v11 = vsub.s32 1, %v1042_v1  ;;  %v38_v12 = vsel %vm36_vm0, %v32_v7, 0.0  ;;  %v44_v15 = vadd.f32 %v43_v13, %v42_v10 }
  0x17   :  { %v39_v14 = vadd.f32 %v38_v12, %v37_v8  ;;  %v1059_v17 = vsub.s32 2, %v1042_v1  ;;  %v1063_v19 = vsub.s32 3, %v1042_v1  ;;  %vm606_vm6 = vcmask 458112  }
  0x18   :  { %v62_v6 = vrot.slane %v47_v3, %v1045_v2  ;;  %1327 = vst [vmem:[#allocation8_spill] sm:$0xff] %v1055_v11  ;;  %v130_v16 = vrot.slane %v47_v3, %v1055_v11  ;;  %vm613_vm7 = vcmask 523712   ;;  %vm654_vm8 = vcmask 1041409  }
  0x19   :  { %40 = vadd.xlane.f32.xlu0 %v39_v14  ;;  %v198_v18 = vrot.slane %v47_v3, %v1059_v17  ;;  %1328 = vst [vmem:[#allocation9_spill] sm:$0xff] %v1063_v19  ;;  %v266_v20 = vrot.slane %v47_v3, %v1063_v19  ;;  %vm737_vm9 = vcmask 523264   ;;  %vm823_vm10 = vcmask 1041408  }
  0x1a   :  { %65 = vbcast.lane.b32.xlu1 %v62_v6, 256 }
  0x1d   :  { %45 = vadd.xlane.f32.xlu0 %v44_v15 }
  0x1e   :  { %69 = vbcast.lane.b32.xlu1 %v62_v6, 264 }
  0x22   :  { %137 = vbcast.lane.b32.xlu1 %v130_v16, 264 }
  0x26   :  { %201 = vbcast.lane.b32.xlu1 %v198_v18, 256 }
  0x2a   :  { %205 = vbcast.lane.b32.xlu1 %v198_v18, 264 }
  0x2e   :  { %269 = vbcast.lane.b32.xlu1 %v266_v20, 256 }
  0x32   :  { %273 = vbcast.lane.b32.xlu1 %v266_v20, 264 }
  0x33   :  { %133 = vbcast.lane.b32.xlu0 %v130_v16, 256 }
  0x36   :  { %73 = vbcast.lane.b32.xlu1 %v62_v6, 272 }
  0x37   :  { %77 = vbcast.lane.b32.xlu0 %v62_v6, 280 }
  0x3a   :  { %141 = vbcast.lane.b32.xlu1 %v130_v16, 272 }
  0x3b   :  { %145 = vbcast.lane.b32.xlu0 %v130_v16, 280 }
  0x3e   :  { %209 = vbcast.lane.b32.xlu1 %v198_v18, 272 }
  0x3f   :  { %213 = vbcast.lane.b32.xlu0 %v198_v18, 280 }
  0x42   :  { %277 = vbcast.lane.b32.xlu1 %v266_v20, 272 }
  0x43   :  { %281 = vbcast.lane.b32.xlu0 %v266_v20, 280 }
  0x46   :  { %81 = vbcast.lane.b32.xlu1 %v62_v6, 288 }
  0x47   :  { %85 = vbcast.lane.b32.xlu0 %v62_v6, 296 }
  0x4a   :  { %149 = vbcast.lane.b32.xlu1 %v130_v16, 288 }
  0x4b   :  { %153 = vbcast.lane.b32.xlu0 %v130_v16, 296 }
  0x4e   :  { %217 = vbcast.lane.b32.xlu1 %v198_v18, 288 }
  0x4f   :  { %221 = vbcast.lane.b32.xlu0 %v198_v18, 296 }
  0x52   :  { %285 = vbcast.lane.b32.xlu1 %v266_v20, 288 }
  0x53   :  { %289 = vbcast.lane.b32.xlu0 %v266_v20, 296 }
  0x56   :  { %89 = vbcast.lane.b32.xlu1 %v62_v6, 304 }
  0x57   :  { %93 = vbcast.lane.b32.xlu0 %v62_v6, 312 }
  0x5a   :  { %157 = vbcast.lane.b32.xlu1 %v130_v16, 304 }
  0x5b   :  { %161 = vbcast.lane.b32.xlu0 %v130_v16, 312 }
  0x5e   :  { %225 = vbcast.lane.b32.xlu1 %v198_v18, 304 }
  0x5f   :  { %229 = vbcast.lane.b32.xlu0 %v198_v18, 312 }
  0x62   :  { %293 = vbcast.lane.b32.xlu1 %v266_v20, 304 }
  0x63   :  { %297 = vbcast.lane.b32.xlu0 %v266_v20, 312 }
  0x66   :  { %373 = vbcast.lane.b32.xlu1 %v48_v21, 256 }
  0x67   :  { %377 = vbcast.lane.b32.xlu0 %v48_v21, 264 }
  0x6a   :  { %381 = vbcast.lane.b32.xlu1 %v48_v21, 272 }
  0x6b   :  { %385 = vbcast.lane.b32.xlu0 %v48_v21, 280 }
  0x6e   :  { %389 = vbcast.lane.b32.xlu1 %v48_v21, 288 }
  0x6f   :  { %393 = vbcast.lane.b32.xlu0 %v48_v21, 296 }
  0x72   :  { %397 = vbcast.lane.b32.xlu1 %v48_v21, 304 }
  0x73   :  { %401 = vbcast.lane.b32.xlu0 %v48_v21, 312 }
  0x8c   :  { %v66_v23 = vpop.permute.xlu1 %65 }
  0x90   :  { %v70_v24 = vpop.permute.xlu1 %69 }
  0x94   :  { %v138_v25 = vpop.permute.xlu1 %137 }
  0x98   :  { %v202_v26 = vpop.permute.xlu1 %201 }
  0x9c   :  { %v206_v27 = vpop.permute.xlu1 %205 }
  0xa0   :  { %v270_v28 = vpop.permute.xlu1 %269 }
  0xa4   :  { %v274_v29 = vpop.permute.xlu1 %273 }
  0xa6   :  { %v41_v31 = vpop.xlane.xlu0 %40 }
  0xa7   :  { %v1097_v55 = vrot.slane %v41_v31, %v1045_v2  ;;  %v1100_v56 = vrot.slane %v41_v31, %v1055_v11  ;;  %v1103_v57 = vrot.slane %v41_v31, %v1059_v17  ;;  %v1106_v58 = vrot.slane %v41_v31, %v1063_v19 }
  0xa8   :  { %v74_v30 = vpop.permute.xlu1 %73 }
  0xa9   :  { %v104_v61 = vmul.f32 %v70_v24, %v1097_v55  ;;  %v172_v62 = vmul.f32 %v138_v25, %v1100_v56  ;;  %v240_v4 = vmul.f32 %v206_v27, %v1103_v57  ;;  %v308_v5 = vmul.f32 %v274_v29, %v1106_v58 }
  0xaa   :  { %v46_v33 = vpop.xlane.xlu0 %45  ;;  %v105_v6 = vmul.f32 %v74_v30, %v1097_v55  ;;  %v103_v8 = vmul.f32 %v66_v23, %v1097_v55  ;;  %v239_v12 = vmul.f32 %v202_v26, %v1103_v57  ;;  %v307_v13 = vmul.f32 %v270_v28, %v1106_v58 }
  0xab   :  { %v1067_v34 = vrot.slane %v46_v33, %v1045_v2  ;;  %v1070_v35 = vrot.slane %v46_v33, %v1055_v11  ;;  %v1115_v63 = vrot.slane %v46_v33, %v1059_v17  ;;  %v1118_v3 = vrot.slane %v46_v33, %v1063_v19 }
  0xac   :  { %v142_v32 = vpop.permute.xlu1 %141  ;;  %v324_v14 = vadd.f32 %v172_v62, %v104_v61  ;;  %v340_v31 = vadd.f32 %v308_v5, %v240_v4 }
  0xad   :  { %v112_v38 = vmul.f32 %v70_v24, %v1067_v34  ;;  %v180_v39 = vmul.f32 %v138_v25, %v1070_v35  ;;  %v173_v7 = vmul.f32 %v142_v32, %v1100_v56  ;;  %v247_v16 = vmul.f32 %v202_v26, %v1115_v63 }
  0xae   :  { %v134_v37 = vpop.permute.xlu0 %133  ;;  %v248_v18 = vmul.f32 %v206_v27, %v1115_v63  ;;  %v316_v20 = vmul.f32 %v274_v29, %v1118_v3  ;;  %v315_v22 = vmul.f32 %v270_v28, %v1118_v3  ;;  %v113_v24 = vmul.f32 %v74_v30, %v1067_v34 }
  0xaf   :  { %v1074_v42 = vadd.f32 %v180_v39, %v112_v38  ;;  %v171_v10 = vmul.f32 %v134_v37, %v1100_v56  ;;  %v179_v15 = vmul.f32 %v134_v37, %v1070_v35  ;;  %v181_v25 = vmul.f32 %v142_v32, %v1070_v35 }
  0xb0   :  { %v210_v36 = vpop.permute.xlu1 %209  ;;  %v111_v33 = vmul.f32 %v66_v23, %v1067_v34  ;;  %v325_v27 = vadd.f32 %v173_v7, %v105_v6  ;;  %v348_v62 = vadd.f32 %v316_v20, %v248_v18  ;;  %v339_v30 = vadd.f32 %v307_v13, %v239_v12 }
  0xb1   :  { %v323_v39 = vadd.f32 %v171_v10, %v103_v8  ;;  %v241_v29 = vmul.f32 %v210_v36, %v1103_v57  ;;  %v249_v61 = vmul.f32 %v210_v36, %v1115_v63  ;;  %v347_v0 = vadd.f32 %v315_v22, %v247_v16 }
  0xb2   :  { %v78_v41 = vpop.permute.xlu0 %77  ;;  %v331_v28 = vadd.f32 %v179_v15, %v111_v33  ;;  %v333_v32 = vadd.f32 %v181_v25, %v113_v24  ;;  %v356_v4 = vadd.f32 %v340_v31, %v324_v14  ;;  %v364_v15 = vadd.f32 %v348_v62, %v1074_v42 }
  0xb3   :  { %v106_v19 = vmul.f32 %v78_v41, %v1097_v55  ;;  %v355_v10 = vadd.f32 %v339_v30, %v323_v39 }
  0xb4   :  { %v278_v40 = vpop.permute.xlu1 %277  ;;  %v363_v14 = vadd.f32 %v347_v0, %v331_v28 }
  0xb5   :  { %v309_v38 = vmul.f32 %v278_v40, %v1106_v58  ;;  %v317_v37 = vmul.f32 %v278_v40, %v1118_v3  ;;  %v114_v40 = vmul.f32 %v78_v41, %v1067_v34 }
  0xb6   :  { %v146_v44 = vpop.permute.xlu0 %145 }
  0xb7   :  { %v341_v5 = vadd.f32 %v309_v38, %v241_v29  ;;  %v349_v23 = vadd.f32 %v317_v37, %v249_v61  ;;  %v174_v6 = vmul.f32 %v146_v44, %v1100_v56  ;;  %v182_v7 = vmul.f32 %v146_v44, %v1070_v35 }
  0xb8   :  { %v1076_v43 = vpop.permute.xlu1 %81 }
  0xb9   :  { %v107_v41 = vmul.f32 %v1076_v43, %v1097_v55  ;;  %v1161_v16 = vmul.f32 %v1076_v43, %v1067_v34  ;;  %v357_v20 = vadd.f32 %v341_v5, %v325_v27  ;;  %v326_v43 = vadd.f32 %v174_v6, %v106_v19 }
  0xba   :  { %v1080_v46 = vpop.permute.xlu0 %213  ;;  %v334_v24 = vadd.f32 %v182_v7, %v114_v40  ;;  %v365_v31 = vadd.f32 %v349_v23, %v333_v32 }
  0xbb   :  { %v242_v18 = vmul.f32 %v1080_v46, %v1103_v57 }
  0xbc   :  { %v1078_v45 = vpop.permute.xlu1 %149 }
  0xbd   :  { %v175_v44 = vmul.f32 %v1078_v45, %v1100_v56  ;;  %v183_v39 = vmul.f32 %v1078_v45, %v1070_v35 }
  0xbe   :  { %v282_v48 = vpop.permute.xlu0 %281 }
  0xbf   :  { %v310_v36 = vmul.f32 %v282_v48, %v1106_v58  ;;  %v318_v12 = vmul.f32 %v282_v48, %v1118_v3  ;;  %v250_v48 = vmul.f32 %v1080_v46, %v1115_v63  ;;  %v327_v29 = vadd.f32 %v175_v44, %v107_v41 }
  0xc0   :  { %v1082_v47 = vpop.permute.xlu1 %217 }
  0xc1   :  { %v243_v0 = vmul.f32 %v1082_v47, %v1103_v57  ;;  %v342_v25 = vadd.f32 %v310_v36, %v242_v18  ;;  %v251_v33 = vmul.f32 %v1082_v47, %v1115_v63  ;;  %v350_v38 = vadd.f32 %v318_v12, %v250_v48 }
  0xc2   :  { %v1086_v50 = vpop.permute.xlu0 %85 }
  0xc3   :  { %v108_v19 = vmul.f32 %v1086_v50, %v1097_v55  ;;  %v116_v32 = vmul.f32 %v1086_v50, %v1067_v34  ;;  %v358_v23 = vadd.f32 %v342_v25, %v326_v43  ;;  %v366_v36 = vadd.f32 %v350_v38, %v334_v24 }
  0xc4   :  { %v1084_v49 = vpop.permute.xlu1 %285 }
  0xc5   :  { %v311_v13 = vmul.f32 %v1084_v49, %v1106_v58  ;;  %v319_v42 = vmul.f32 %v1084_v49, %v1118_v3 }
  0xc6   :  { %v1090_v52 = vpop.permute.xlu0 %153 }
  0xc7   :  { %v343_v37 = vadd.f32 %v311_v13, %v243_v0  ;;  %v351_v28 = vadd.f32 %v319_v42, %v251_v33  ;;  %v176_v62 = vmul.f32 %v1090_v52, %v1100_v56 }
  0xc8   :  { %v1088_v51 = vpop.permute.xlu1 %89 }
  0xc9   :  { %v359_v7 = vadd.f32 %v343_v37, %v327_v29  ;;  %v328_v41 = vadd.f32 %v176_v62, %v108_v19 }
  0xca   :  { %v1094_v54 = vpop.permute.xlu0 %221 }
  0xcb   :  { %v244_v47 = vmul.f32 %v1094_v54, %v1103_v57  ;;  %v252_v37 = vmul.f32 %v1094_v54, %v1115_v63  ;;  %v335_v54 = vadd.f32 %v183_v39, %v1161_v16 }
  0xcc   :  { %v1092_v53 = vpop.permute.xlu1 %157 }
  0xcd   :  { %v177_v44 = vmul.f32 %v1092_v53, %v1100_v56 }
  0xce   :  { %v1108_v59 = vpop.permute.xlu0 %289 }
  0xcf   :  { %v312_v46 = vmul.f32 %v1108_v59, %v1106_v58  ;;  %v320_v50 = vmul.f32 %v1108_v59, %v1118_v3 }
  0xd0   :  { %v1110_v60 = vpop.permute.xlu1 %225 }
  0xd1   :  { %v344_v40 = vadd.f32 %v312_v46, %v244_v47  ;;  %v245_v46 = vmul.f32 %v1110_v60, %v1103_v57  ;;  %v109_v47 = vmul.f32 %v1088_v51, %v1097_v55 }
  0xd2   :  { %v1125_v9 = vpop.permute.xlu0 %93 }
  0xd3   :  { %v360_v24 = vadd.f32 %v344_v40, %v328_v41 }
  0xd4   :  { %v1134_v21 = vpop.permute.xlu1 %293 }
  0xd5   :  { %v313_v42 = vmul.f32 %v1134_v21, %v1106_v58 }
  0xd6   :  { %v1142_v26 = vpop.permute.xlu0 %161 }
  0xd8   :  { %v374_v8 = vpop.permute.xlu1 %373 }
  0xd9   :  { %v411_v49 = vadd.f32 %v374_v8, %v355_v10  ;;  %v419_v27 = vadd.f32 %v374_v8, %v363_v14  ;;  %v184_v14 = vmul.f32 %v1090_v52, %v1070_v35  ;;  %v178_v52 = vmul.f32 %v1142_v26, %v1100_v56 }
  0xda   :  { %v1148_v11 = vpop.permute.xlu0 %229 }
  0xdb   :  { %v427_v8 = vmax.f32 %v411_v49, 0.0  ;;  %v435_v10 = vmax.f32 %v419_v27, 0.0  ;;  %v246_v25 = vmul.f32 %v1148_v11, %v1103_v57 }
  0xdc   :  { %v382_v61 = vpop.permute.xlu1 %381 }
  0xdd   :  { %v413_v6 = vadd.f32 %v382_v61, %v357_v20 }
  0xde   :  { %v1173_v22 = vpop.permute.xlu0 %297 }
  0xdf   :  { %v429_v20 = vmax.f32 %v413_v6, 0.0  ;;  %v336_v6 = vadd.f32 %v184_v14, %v116_v32  ;;  %v186_v32 = vmul.f32 %v1142_v26, %v1070_v35  ;;  %v118_v26 = vmul.f32 %v1125_v9, %v1067_v34 }
  0xe0   :  { %v390_v43 = vpop.permute.xlu1 %389 }
  0xe1   :  { %v415_v49 = vadd.f32 %v390_v43, %v359_v7 }
  0xe2   :  { %v378_v30 = vpop.permute.xlu0 %377 }
  0xe3   :  { %v412_v5 = vadd.f32 %v378_v30, %v356_v4  ;;  %v420_v45 = vadd.f32 %v378_v30, %v364_v15  ;;  %v314_v15 = vmul.f32 %v1173_v22, %v1106_v58  ;;  %v110_v58 = vmul.f32 %v1125_v9, %v1097_v55 }
  0xe4   :  { %v352_v30 = vadd.f32 %v320_v50, %v252_v37  ;;  %v431_v41 = vmax.f32 %v415_v49, 0.0  ;;  %v398_v16 = vpop.permute.xlu1 %397 }
  0xe5   :  { %v428_v12 = vmax.f32 %v412_v5, 0.0  ;;  %v436_v13 = vmax.f32 %v420_v45, 0.0  ;;  %v346_v27 = vadd.f32 %v314_v15, %v246_v25  ;;  %v345_v5 = vadd.f32 %v313_v42, %v245_v46 }
  0xe6   :  { %v386_v4 = vpop.permute.xlu0 %385  ;;  %v421_v45 = vadd.f32 %v382_v61, %v365_v31  ;;  %v330_v57 = vadd.f32 %v178_v52, %v110_v58  ;;  %v322_v31 = vmul.f32 %v1173_v22, %v1118_v3  ;;  %v368_v61 = vadd.f32 %v352_v30, %v336_v6  ;;  %v925_v30 = vld [vmem:[%s1322_s2 + $0xc] ss:$16 sps:$4 sm:$0xff]   ;;  %v934_v6 = vld [vmem:[%s1322_s2 + $0x28] ss:$16 sps:$4 sm:$0xff]  }
  0xe7   :  { %v443_v18 = vpack.c.bf16 %v428_v12, %v427_v8  ;;  %v447_v48 = vpack.c.bf16 %v436_v13, %v435_v10  ;;  %v414_v0 = vadd.f32 %v386_v4, %v358_v23  ;;  %v422_v29 = vadd.f32 %v386_v4, %v366_v36  ;;  %782 = vmatprep.subr.bf16.mxu1 %v925_v30 }
  0xe8   :  { %v329_v36 = vadd.f32 %v177_v44, %v109_v47  ;;  %v321_v12 = vmul.f32 %v1134_v21, %v1118_v3  ;;  %v367_v13 = vadd.f32 %v351_v28, %v335_v54  ;;  %v362_v55 = vadd.f32 %v346_v27, %v330_v57  ;;  %v923_v47 = vld [vmem:[%s1322_s2 + $0x4] ss:$16 sps:$4 sm:$0xff]  }
  0xe9   :  { %v430_v59 = vmax.f32 %v414_v0, 0.0  ;;  %v497_v33 = vunpack.c.h.b16 %v443_v18  ;;  %v496_v38 = vunpack.c.l.b16 %v443_v18  ;;  %v438_v8 = vmax.f32 %v422_v29, 0.0  ;;  %741 = vmatprep.subr.bf16.mxu0 %v923_v47  ;;  %v929_v57 = vld [vmem:[%s1322_s2 + $0x24] ss:$16 sps:$4 sm:$0xff]  }
  0xea   :  { %v394_v56 = vpop.permute.xlu0 %393  ;;  %v504_v10 = vunpack.c.l.b16 %v447_v48  ;;  %v437_v50 = vmax.f32 %v421_v45, 0.0  ;;  %v361_v39 = vadd.f32 %v345_v5, %v329_v36  ;;  %v254_v21 = vmul.f32 %v1148_v11, %v1115_v63  ;;  %v927_v5 = vld [vmem:[%s1322_s2] ss:$16 sps:$4 sm:$0xff]   ;;  %v928_v45 = vld [vmem:[%s1322_s2 + $0x8] ss:$16 sps:$4 sm:$0xff]  }
  0xeb   :  { %v444_v19 = vpack.c.bf16 %v430_v59, %v429_v20  ;;  %v416_v62 = vadd.f32 %v394_v56, %v360_v24  ;;  %516 = vperm.xlu0 %920, %v497_v33   ;;  %513 = vperm.xlu1 %919, %v496_v38   ;;  %v424_v15 = vadd.f32 %v394_v56, %v368_v61  ;;  %v505_v18 = vunpack.c.h.b16 %v447_v48 }
  0xec   :  { %v448_v28 = vpack.c.bf16 %v438_v8, %v437_v50  ;;  %v185_v0 = vmul.f32 %v1092_v53, %v1070_v35  ;;  %v417_v3 = vadd.f32 %v398_v16, %v361_v39  ;;  %v253_v22 = vmul.f32 %v1110_v60, %v1115_v63  ;;  %742 = vmatpush1.bf16.msra.mxu0 %v927_v5  ;;  %v935_v8 = vld [vmem:[%s1322_s2 + $0x44] ss:$16 sps:$4 sm:$0xff]   ;;  %v946_v50 = vld [vmem:[%s1322_s2 + $0x68] ss:$16 sps:$4 sm:$0xff]  }
  0xed   :  { %v432_v23 = vmax.f32 %v416_v62, 0.0  ;;  %v498_v40 = vunpack.c.l.b16 %v444_v19  ;;  %v499_v4 = vunpack.c.h.b16 %v444_v19  ;;  %v423_v42 = vadd.f32 %v390_v43, %v367_v13  ;;  %783 = vmatpush1.bf16.msra.mxu1 %v928_v45  ;;  %743 = vmatprep.subr.bf16.mxu0 %v929_v57  ;;  %v941_v13 = vld [vmem:[%s1322_s2 + $0x64] ss:$16 sps:$4 sm:$0xff]  }
  0xee   :  { %v402_v7 = vpop.permute.xlu0 %401  ;;  %v354_v52 = vadd.f32 %v322_v31, %v254_v21  ;;  %v117_v11 = vmul.f32 %v1088_v51, %v1067_v34  ;;  %v353_v48 = vadd.f32 %v321_v12, %v253_v22  ;;  %v338_v25 = vadd.f32 %v186_v32, %v118_v26  ;;  %v940_v12 = vld [vmem:[%s1322_s2 + $0x48] ss:$16 sps:$4 sm:$0xff]  }
  0xef   :  { %519 = vperm.xlu0 %920, %v498_v40   ;;  %537 = vperm.xlu1 %919, %v504_v10   ;;  %v445_v14 = vpack.c.bf16 %v432_v23, %v431_v41  ;;  %v418_v44 = vadd.f32 %v402_v7, %v362_v55  ;;  %v440_v59 = vmax.f32 %v424_v15, 0.0  ;;  %v506_v35 = vunpack.c.l.b16 %v448_v28  ;;  %v931_v23 = vld [vmem:[%s1322_s2 + $0x2c] ss:$16 sps:$4 sm:$0xff]   ;;  %v933_v40 = vld [vmem:[%s1322_s2 + $0x20] ss:$16 sps:$4 sm:$0xff]  }
  0xf0   :  { %v433_v53 = vmax.f32 %v417_v3, 0.0  ;;  %v337_v33 = vadd.f32 %v185_v0, %v117_v11  ;;  %v439_v38 = vmax.f32 %v423_v42, 0.0  ;;  %v370_v60 = vadd.f32 %v354_v52, %v338_v25  ;;  %784 = vmatprep.subr.bf16.mxu1 %v931_v23  ;;  %744 = vmatpush1.bf16.msra.mxu0 %v933_v40  ;;  %v939_v10 = vld [vmem:[%s1322_s2 + $0x40] ss:$16 sps:$4 sm:$0xff]   ;;  %v943_v41 = vld [vmem:[%s1322_s2 + $0x6c] ss:$16 sps:$4 sm:$0xff]  }
  0xf1   :  { %v434_v20 = vmax.f32 %v418_v44, 0.0  ;;  %v500_v24 = vunpack.c.l.b16 %v445_v14  ;;  %v501_v9 = vunpack.c.h.b16 %v445_v14  ;;  %v507_v58 = vunpack.c.h.b16 %v448_v28  ;;  %785 = vmatpush1.bf16.msra.mxu1 %v934_v6  ;;  %745 = vmatprep.subr.bf16.mxu0 %v935_v8  ;;  %v945_v55 = vld [vmem:[%s1322_s2 + $0x60] ss:$16 sps:$4 sm:$0xff]  }
  0xf2   :  { %v369_v43 = vadd.f32 %v353_v48, %v337_v33  ;;  %v449_v37 = vpack.c.bf16 %v440_v59, %v439_v38  ;;  %v426_v46 = vadd.f32 %v402_v7, %v370_v60  ;;  %v937_v7 = vld [vmem:[%s1322_s2 + $0x4c] ss:$16 sps:$4 sm:$0xff]   ;;  %v1329_v21 = vlaneseq  ;;  %s1008_s2 = smov [#allocation5]  }
  0xf3   :  { %522 = vperm.xlu0 %920, %v499_v4   ;;  %540 = vperm.xlu1 %919, %v505_v18   ;;  %v446_v63 = vpack.c.bf16 %v434_v20, %v433_v53  ;;  %s888_s29 = sshll.u32 %s1008_s2, 4  ;;  %s889_s29 = int_to_ptr.vmem [resolvable:$true] %s888_s29 }
  0xf4   :  { %v425_v34 = vadd.f32 %v398_v16, %v369_v43  ;;  %v442_v29 = vmax.f32 %v426_v46, 0.0  ;;  %v508_v56 = vunpack.c.l.b16 %v449_v37  ;;  %v509_v62 = vunpack.c.h.b16 %v449_v37  ;;  %786 = vmatprep.subr.bf16.mxu1 %v937_v7  ;;  %746 = vmatpush1.bf16.msra.mxu0 %v939_v10  ;;  %s979_s30 = scalar_lea.vmem %s889_s29, 128  ;;  %p984_p9 = scmp.lt.s32.totalorder %s889_s29, %s889_s29 }
  0xf5   :  { %v502_v51 = vunpack.c.l.b16 %v446_v63  ;;  %v503_v27 = vunpack.c.h.b16 %v446_v63  ;;  %787 = vmatpush1.bf16.msra.mxu1 %v940_v12  ;;  %747 = vmatprep.subr.bf16.mxu0 %v941_v13  ;;  %v561_v28 = vand.u32 127, %v1329_v21  ;;  %p980_p8 = scmp.ne.s32.totalorder %s889_s29, %s979_s30  ;;  %p985_p10 = scmp.lt.s32.totalorder %s979_s30, %s979_s30 }
  0xf6   :  { %v441_v49 = vmax.f32 %v425_v34, 0.0  ;;  %788 = vmatprep.subr.bf16.mxu1 %v943_v41 }
  0xf7   :  { %525 = vperm.xlu0 %920, %v500_v24   ;;  %543 = vperm.xlu1 %919, %v506_v35   ;;  %v566_v0 = vadd.s32 4294967288, %v561_v28  ;;  %v573_v3 = vadd.s32 4294967280, %v561_v28  ;;  %v580_v22 = vadd.s32 4294967272, %v561_v28  ;;  %v587_v26 = vadd.s32 4294967264, %v561_v28  ;;  %p986_p11 = por %p985_p10, %p984_p9 }
  0xf8   :  { %v450_v19 = vpack.c.bf16 %v442_v29, %v441_v49  ;;  %748 = vmatpush1.bf16.msra.mxu0 %v945_v55  ;;  %v564_v52 = vsub.s32 %v561_v28, %v1042_v1  ;;  %v594_v20 = vadd.s32 4294967256, %v561_v28  ;;  %v601_v48 = vadd.s32 4294967248, %v561_v28 }
  0xf9   :  { %789 = vmatpush1.bf16.msra.mxu1 %v946_v50  ;;  %v569_v11 = vsub.s32 %v566_v0, %v1042_v1  ;;  %v576_v24 = vsub.s32 %v573_v3, %v1042_v1  ;;  %v583_v59 = vsub.s32 %v580_v22, %v1042_v1  ;;  %v608_v35 = vadd.s32 4294967240, %v561_v28  ;;  %v1331_v28 = vld [vmem:[#allocation9_spill] sm:$0xff]  ;;  %p987_p12 = pnand %p986_p11, %p980_p8 }
  0xfa   :  { %v510_v54 = vunpack.c.l.b16 %v450_v19  ;;  %v511_v36 = vunpack.c.h.b16 %v450_v19  ;;  %v590_v53 = vsub.s32 %v587_v26, %v1042_v1  ;;  %v604_v46 = vsub.s32 %v601_v48, %v1042_v1 }
  0xfb   :  { %528 = vperm.xlu0 %920, %v501_v9   ;;  %546 = vperm.xlu1 %919, %v507_v58   ;;  %v597_v9 = vsub.s32 %v594_v20, %v1042_v1  ;;  %v611_v29 = vsub.s32 %v608_v35, %v1042_v1 }
  0xff   :  { %531 = vperm.xlu0 %920, %v502_v51   ;;  %549 = vperm.xlu1 %919, %v508_v56  }
 0x103   :  { %534 = vperm.xlu0 %920, %v503_v27   ;;  %552 = vperm.xlu1 %919, %v509_v62  }
 0x107   :  { %555 = vperm.xlu1 %919, %v510_v54  }
 0x10b   :  { %558 = vperm.xlu1 %919, %v511_v36  }
 0x16a   :  { %v517_v31 = vpop.permute.xlu0 %516  ;;  %v514_v16 = vpop.permute.xlu1 %513 }
 0x16b   :  { %v565_v38 = vrot.slane %v514_v16, %v564_v52  ;;  %v570_v60 = vrot.slane %v517_v31, %v569_v11 }
 0x16d   :  { %v572_v62 = vsel %vm571_vm1, %v570_v60, %v565_v38 }
 0x16e   :  { %v520_v39 = vpop.permute.xlu0 %519  ;;  %v538_v61 = vpop.permute.xlu1 %537 }
 0x16f   :  { %v577_v43 = vrot.slane %v520_v39, %v576_v24  ;;  %v618_v58 = vrot.slane %v538_v61, %v564_v52 }
 0x171   :  { %v579_v45 = vsel %vm578_vm2, %v577_v43, %v572_v62 }
 0x172   :  { %v523_v32 = vpop.permute.xlu0 %522  ;;  %v541_v14 = vpop.permute.xlu1 %540 }
 0x173   :  { %v622_v63 = vrot.slane %v541_v14, %v569_v11  ;;  %v584_v34 = vrot.slane %v523_v32, %v583_v59  ;;  %v50_v32 = vld [vmem:[#allocation2 + $0x5] ss:$8 sm:$0xf] }
 0x174   :  { %v471_v14 = vrot.slane %v50_v32, %v1045_v2 }
 0x175   :  { %v623_v47 = vsel %vm571_vm1, %v622_v63, %v618_v58  ;;  %v586_v40 = vsel %vm585_vm3, %v584_v34, %v579_v45 }
 0x176   :  { %v526_v44 = vpop.permute.xlu0 %525  ;;  %v544_v4 = vpop.permute.xlu1 %543 }
 0x177   :  { %v627_v37 = vrot.slane %v544_v4, %v576_v24  ;;  %v591_v56 = vrot.slane %v526_v44, %v590_v53  ;;  %v479_v44 = vrot.slane %v50_v32, %v1059_v17  ;;  %v1330_v4 = vld [vmem:[#allocation8_spill] sm:$0xff] }
 0x178   :  { %v475_v21 = vrot.slane %v50_v32, %v1330_v4 }
 0x179   :  { %v628_v54 = vsel %vm578_vm2, %v627_v37, %v623_v47  ;;  %v593_v8 = vsel %vm592_vm4, %v591_v56, %v586_v40 }
 0x17a   :  { %v547_v15 = vpop.permute.xlu1 %546  ;;  %v529_v18 = vpop.permute.xlu0 %528 }
 0x17b   :  { %v632_v51 = vrot.slane %v547_v15, %v583_v59  ;;  %v598_v30 = vrot.slane %v529_v18, %v597_v9  ;;  %v483_v15 = vrot.slane %v50_v32, %v1331_v28 }
 0x17d   :  { %v633_v6 = vsel %vm585_vm3, %v632_v51, %v628_v54  ;;  %v600_v12 = vsel %vm599_vm5, %v598_v30, %v593_v8 }
 0x17e   :  { %v550_v42 = vpop.permute.xlu1 %549  ;;  %v532_v25 = vpop.permute.xlu0 %531 }
 0x17f   :  { %v637_v49 = vrot.slane %v550_v42, %v590_v53  ;;  %v605_v57 = vrot.slane %v532_v25, %v604_v46 }
 0x181   :  { %v638_v7 = vsel %vm592_vm4, %v637_v49, %v633_v6  ;;  %v607_v55 = vsel %vm606_vm6, %v605_v57, %v600_v12 }
 0x182   :  { %v553_v33 = vpop.permute.xlu1 %552  ;;  %v535_v27 = vpop.permute.xlu0 %534 }
 0x183   :  { %v642_v5 = vrot.slane %v553_v33, %v597_v9  ;;  %v612_v36 = vrot.slane %v535_v27, %v611_v29 }
 0x185   :  { %v643_v13 = vsel %vm599_vm5, %v642_v5, %v638_v7  ;;  %v614_v31 = vsel %vm613_vm7, %v612_v36, %v607_v55 }
 0x186   :  { %v556_v19 = vpop.permute.xlu1 %555 }
 0x187   :  { %v647_v23 = vrot.slane %v556_v19, %v604_v46 }
 0x189   :  { %v648_v50 = vsel %vm606_vm6, %v647_v23, %v643_v13  ;;  %v1007_v23 = vmov 1983009808  }
 0x18a   :  { %v559_v10 = vpop.permute.xlu1 %558  ;;  %v866_v40 = vunpack.c.l.s4 %v1007_v23 }
 0x18b   :  { %v652_v41 = vrot.slane %v559_v10, %v611_v29 }
 0x18c   :  { %v867_v6 = vunpack.c.0.s8 %v866_v40 }
 0x18d   :  { %v653_v16 = vsel %vm613_vm7, %v652_v41, %v648_v50 }
 0x18e   :  { %v655_v39 = vsel %vm654_vm8, %v653_v16, %v614_v31  ;;  %v870_v8 = vsub.s32 %v867_v6, %v1042_v1 }
 0x18f   :  { %v656_v61 = vpack.c.b16 %v655_v39, %v655_v39 }
 0x191   :  { %913 = vmatmul.mubr.msk.bf16.vlgmr.msra.gmra.mrb[0].mxu0 %vm737_vm9, %v656_v61  ;;  %914 = vmatmul.mubr.msk.bf16.vlgmr.msra.gmra.mrb[0].mxu1 %vm737_vm9, %v656_v61 }
 0x264   :  { %v775_v18 = vpop.f32.mrb[0].mxu0  ;;  %v816_v0 = vpop.f32.mrb[0].mxu1 }
 0x265   :  { %v776_v3 = vadd.f32 %v775_v18, %v471_v14  ;;  %v817_v22 = vadd.f32 %v816_v0, %v479_v44  ;;  %v777_v26 = vpop.f32.mrb[1].mxu0  ;;  %v818_v42 = vpop.f32.mrb[1].mxu1 }
 0x266   :  { %v778_v52 = vadd.f32 %v777_v26, %v475_v21  ;;  %v819_v11 = vadd.f32 %v818_v42, %v483_v15  ;;  %v779_v20 = vpop.f32.mrb[2].mxu0  ;;  %v820_v24 = vpop.f32.mrb[2].mxu1 }
 0x267   :  { %v824_v48 = vsel %vm823_vm10, %v776_v3, -inf  ;;  %v826_v2 = vsel %vm823_vm10, %v817_v22, -inf  ;;  %v780_v17 = vpop.f32.mrb[3].mxu0  ;;  %v821_v25 = vpop.f32.mrb[3].mxu1 }
 0x268   :  { %v825_v59 = vsel %vm823_vm10, %v778_v52, -inf  ;;  %v827_v35 = vsel %vm823_vm10, %v819_v11, -inf }
 0x269   :  { %v828_v53 = vmax.f32 %v824_v48, %v825_v59  ;;  %v829_v33 = vmax.f32 %v826_v2, %v827_v35 }
 0x26b   :  { %v830_v38 = vmax.f32 %v828_v53, %v829_v33 }
 0x26d   :  { %831 = vmax.xlane.f32.xlu0 %v830_v38 }
 0x2fa   :  { %v832_v60 = vpop.xlane.xlu0 %831 }
 0x2fb   :  { %v833_v63 = vsub.f32 %v776_v3, %v832_v60  ;;  %v834_v9 = vsub.f32 %v778_v52, %v832_v60  ;;  %v835_v43 = vsub.f32 %v817_v22, %v832_v60  ;;  %v836_v37 = vsub.f32 %v819_v11, %v832_v60 }
 0x2fd   :  { %v837_v46 = vmul.f32 1.442695, %v833_v63  ;;  %v839_v58 = vmul.f32 1.442695, %v834_v9  ;;  %v841_v34 = vmul.f32 1.442695, %v835_v43 }
 0x2fe   :  { %v843_v51 = vmul.f32 1.442695, %v836_v37 }
 0x2ff   :  { %947 = vpow2.f32 %v837_v46 }
 0x300   :  { %949 = vpow2.f32 %v839_v58 }
 0x301   :  { %951 = vpow2.f32 %v841_v34 }
 0x302   :  { %953 = vpow2.f32 %v843_v51 }
 0x309   :  { %v948_v29 = vpop.eup %947 }
 0x30a   :  { %v950_v56 = vpop.eup %949  ;;  %v845_v49 = vsel %vm823_vm10, %v948_v29, 0.0 }
 0x30b   :  { %v952_v27 = vpop.eup %951  ;;  %v846_v19 = vsel %vm823_vm10, %v950_v56, 0.0 }
 0x30c   :  { %v954_v62 = vpop.eup %953  ;;  %v847_v47 = vadd.f32 %v846_v19, %v845_v49  ;;  %v848_v30 = vsel %vm823_vm10, %v952_v27, 0.0 }
 0x30d   :  { %v850_v45 = vsel %vm823_vm10, %v954_v62, 0.0 }
 0x30e   :  { %v849_v5 = vadd.f32 %v848_v30, %v847_v47 }
 0x310   :  { %v851_v54 = vadd.f32 %v850_v45, %v849_v5 }
 0x312   :  { %852 = vadd.xlane.f32.xlu1 %v851_v54 }
 0x39f   :  { %v853_v57 = vpop.xlane.xlu1 %852 }
 0x3a0   :  { %955 = vrcp.f32 %v853_v57 }
 0x3aa   :  { %v956_v36 = vpop.eup %955 }
 0x3ab   :  { %v855_v7 = vmul.f32 %v956_v36, %v948_v29  ;;  %v856_v10 = vmul.f32 %v956_v36, %v950_v56  ;;  %v857_v12 = vmul.f32 %v956_v36, %v952_v27  ;;  %v858_v13 = vmul.f32 %v956_v36, %v954_v62 }
 0x3ad   :  { %v863_v41 = vcombine.low %v855_v7, %v856_v10  ;;  %v864_v55 = vcombine.low %v857_v12, %v858_v13 }
 0x3af   :  { %v871_v50 = vrot.slane %v863_v41, %v870_v8  ;;  %v878_v31 = vrot.slane %v864_v55, %v870_v8 }
 0x3b1   :  { %v879_v16 = vcombine.low %v871_v50, %v878_v31 }
 0x3b3   :  { %881 = vst [vmem:[#allocation5] sm:$0xff] %v879_v16 }
 0x3b4   :  { %990 = shalt.err (!%p987_p12)
}
 0x3b5   :  { %s991_s6 = scalar_lea.hbm %s1323_s3, 128 }
 0x3b6   :  { %p992_p13 = scmp.ne.s32.totalorder %s1323_s3, %s991_s6  ;;  %p995_p0 = scmp.lt.u32.totalorder %s991_s6, %s1323_s3 }
 0x3b8   :  { %p997_p1 = pnand %p995_p0, %p992_p13 }
 0x3ba   :  { %1000 = shalt.err (!%p997_p1)
}
 0x3bb   :  { %891 = dma.vmem_to_hbm [thread:$0]  %s889_s29, 128, %s1323_s3, [#allocation4]  }
 0x3bc   :  { %1003 = dma.done.wait [#allocation4], 128  }
 0x3bd   :  { %1004 = vsyncadd [#allocation4], 4294967168 }
 0x3be   :  { %895 = vsyncpa [#allocation3], 1 }
 0x3bf   :  { %896 = vsyncpa [#allocation4], 1 }

</bundles_post_ra>
